<compile_context>
chip_gen: v6e
topology: v6e:2x2x1
jax: 0.10.0
libtpu: 0.0.40
codegen_flags: <defaults>
</compile_context>

<pallas_src>
import functools

import jax
import jax.numpy as jnp
from jax import lax
from jax.experimental import pallas as pl
from jax.experimental.pallas import tpu as pltpu


def w_kernel(x_ref, wh_ref, bh_ref, wv_ref, bv_ref, w1_ref, w2_ref, m_ref,
             o_ref, *, width):
    """Fused forward of module W for one lane-batched block of images.

    x_ref  : (Cin, L)   input, L = Bn * H * W (spatially flattened, batch in lanes)
    wh_ref : (Cin, 3)   depthwise (1,3) conv taps (per channel)
    bh_ref : (Cin, 1)   its bias
    wv_ref : (Cin, 3)   depthwise (3,1) conv taps (per channel)
    bv_ref : (Cin, 1)   its bias
    w1_ref : (Cin, Cin) 1x1 conv convh_1 (no bias), out = w1 @ in
    w2_ref : (Cout, Cin)1x1 conv convv_1 (no bias), out = w2 @ in
    m_ref  : (4, L)     rows = [x>0 mask, x<W-1 mask, y>0 mask, y<H-1 mask]
    o_ref  : (Cout, L)
    width  : static image width W (roll amount for the vertical taps)
    """
    L = x_ref.shape[1]
    x = x_ref[...]                           # (Cin, L)
    wh = wh_ref[...]
    wv = wv_ref[...]
    ml = m_ref[0:1, :]                       # (x-1) neighbour valid
    mr = m_ref[1:2, :]                       # (x+1) neighbour valid
    mu = m_ref[2:3, :]                       # (y-1) neighbour valid
    md = m_ref[3:4, :]                       # (y+1) neighbour valid

    # ---- stage 1: depthwise (1,3) conv along W + bias + relu -----------------
    # out[c,i] = wh[c,0]*x[c,i-1] + wh[c,1]*x[c,i] + wh[c,2]*x[c,i+1]
    # (+-1 taps are XLU lane rotations; masks zero them at row / image edges)
    x_l = pltpu.roll(x, shift=1, axis=1) * ml
    x_r = pltpu.roll(x, shift=L - 1, axis=1) * mr
    t0 = wh[:, 1:2] * x + bh_ref[...]        # bias folded into one FMA chain
    t1 = wh[:, 0:1] * x_l + wh[:, 2:3] * x_r # independent chain -> VALU ILP
    h1 = jnp.maximum(t0 + t1, 0.0)           # (Cin, L)

    # ---- stage 2: 1x1 conv convh_1 (lane-dense MXU matmul, N = L) ------------
    h2 = jnp.dot(w1_ref[...], h1, preferred_element_type=jnp.float32)

    # ---- stage 3: depthwise (3,1) conv along H + bias + relu -----------------
    # +-W taps are XLU lane rotations of h2 (no scratch round trip); masks zero
    # them at the y = 0 / y = H-1 rows (and across image boundaries).
    up = pltpu.roll(h2, shift=width, axis=1) * mu        # h2[c, y-1, x]
    dn = pltpu.roll(h2, shift=L - width, axis=1) * md    # h2[c, y+1, x]
    s0 = wv[:, 1:2] * h2 + bv_ref[...]
    s1 = wv[:, 0:1] * up + wv[:, 2:3] * dn
    v1 = jnp.maximum(s0 + s1, 0.0)           # (Cin, L)

    # ---- stage 4: 1x1 conv convv_1 -> Cout (lane-dense MXU matmul) -----------
    out = jnp.dot(w2_ref[...], v1, preferred_element_type=jnp.float32)
    o_ref[...] = out.astype(o_ref.dtype)     # (Cout, L): dense unmasked store


def w_forward_pallas(x_nchw, wh, bh, wv, bv, w1, w2, *, bn=None):
    """x_nchw: (N, Cin, H, W) -> (N, Cout, H, W), matching the PyTorch module."""
    N, Cin, H, Wd = x_nchw.shape
    Cout = w2.shape[0]
    HW = H * Wd

    if bn is None:
        # Keep >= 2 grid steps so both v7x TensorCores get a step via
        # dimension_semantics=("parallel",).  On single-TC chips (v5e/v6e)
        # pass bn=N explicitly to fold everything into one big step.
        bn = N // 2 if (N >= 2 and N % 2 == 0) else 1
    assert N % bn == 0, "batch must be divisible by the per-step batch"
    L = bn * HW
    assert (L % 128 == 0) or (bn == N), "lane block must be 128-aligned"

    # Channel-first, batch-in-lanes layout: every block's lane dim is Bn*H*W,
    # so VPU ops, both MXU matmuls and the output store are lane-dense.
    x_lane = (x_nchw.astype(jnp.float32)
              .reshape(N, Cin, HW).transpose(1, 0, 2).reshape(Cin, N * HW))

    # Precomputed neighbour-validity masks (no iota/mod in-kernel).  They also
    # zero the wrap-around taps across image boundaries inside a batched block.
    idx = jnp.arange(L, dtype=jnp.int32)
    col = idx % Wd
    row = (idx // Wd) % H
    masks = jnp.stack([(col > 0), (col < Wd - 1),
                       (row > 0), (row < H - 1)]).astype(jnp.float32)  # (4, L)

    bh2 = bh.reshape(Cin, 1).astype(jnp.float32)
    bv2 = bv.reshape(Cin, 1).astype(jnp.float32)

    kernel = functools.partial(w_kernel, width=Wd)

    out_lane = pl.pallas_call(
        kernel,
        out_shape=jax.ShapeDtypeStruct((Cout, N * HW), jnp.float32),
        grid_spec=pltpu.PrefetchScalarGridSpec(
            num_scalar_prefetch=0,
            grid=(N // bn,),
            in_specs=[
                pl.BlockSpec((Cin, L), lambda g: (0, g)),
                pl.BlockSpec((Cin, 3), lambda g: (0, 0)),
                pl.BlockSpec((Cin, 1), lambda g: (0, 0)),
                pl.BlockSpec((Cin, 3), lambda g: (0, 0)),
                pl.BlockSpec((Cin, 1), lambda g: (0, 0)),
                pl.BlockSpec((Cin, Cin), lambda g: (0, 0)),
                pl.BlockSpec((Cout, Cin), lambda g: (0, 0)),
                pl.BlockSpec((4, L), lambda g: (0, 0)),
            ],
            out_specs=pl.BlockSpec((Cout, L), lambda g: (0, g)),
        ),
        compiler_params=pltpu.CompilerParams(
            dimension_semantics=("parallel",)),
    )(x_lane, wh, bh2, wv, bv2, w1, w2, masks)

    return (out_lane.reshape(Cout, N, HW).transpose(1, 0, 2)
            .reshape(N, Cout, H, Wd))


def w_forward_reference(x, wh_t, bh, wv_t, bv, w1_t, w2_t):
    """Direct lax translation of the PyTorch module (NCHW / OIHW)."""
    dn = ("NCHW", "OIHW", "NCHW")
    Cin = x.shape[1]
    hp = lax.Precision.HIGHEST
    h = lax.conv_general_dilated(x, wh_t, (1, 1), ((0, 0), (1, 1)),
                                 dimension_numbers=dn,
                                 feature_group_count=Cin, precision=hp)
    h = jnp.maximum(h + bh.reshape(1, Cin, 1, 1), 0.0)
    h = lax.conv_general_dilated(h, w1_t, (1, 1), ((0, 0), (0, 0)),
                                 dimension_numbers=dn, precision=hp)
    v = lax.conv_general_dilated(h, wv_t, (1, 1), ((1, 1), (0, 0)),
                                 dimension_numbers=dn,
                                 feature_group_count=Cin, precision=hp)
    v = jnp.maximum(v + bv.reshape(1, Cin, 1, 1), 0.0)
    v = lax.conv_general_dilated(v, w2_t, (1, 1), ((0, 0), (0, 0)),
                                 dimension_numbers=dn, precision=hp)
    return v


if __name__ == "__main__":
    key = jax.random.PRNGKey(0)
    N, Cin, Cout, H, W = 2, 4, 8, 16, 16

    kx, k1, k2, k3, k4, k5, k6 = jax.random.split(key, 7)
    x = jax.random.normal(kx, (N, Cin, H, W), jnp.float32)

    # Deterministic synthetic parameters in PyTorch layouts.
    wh_t = jax.random.uniform(k1, (Cin, 1, 1, 3), jnp.float32, -1., 1.) / jnp.sqrt(3.0)
    bh = jax.random.uniform(k2, (Cin,), jnp.float32, -1., 1.) / jnp.sqrt(3.0)
    wv_t = jax.random.uniform(k3, (Cin, 1, 3, 1), jnp.float32, -1., 1.) / jnp.sqrt(3.0)
    bv = jax.random.uniform(k4, (Cin,), jnp.float32, -1., 1.) / jnp.sqrt(3.0)
    w1_t = jax.random.uniform(k5, (Cin, Cin, 1, 1), jnp.float32, -1., 1.) / jnp.sqrt(float(Cin))
    w2_t = jax.random.uniform(k6, (Cout, Cin, 1, 1), jnp.float32, -1., 1.) / jnp.sqrt(float(Cin))

    # Kernel-layout parameters (depthwise taps as (C,3), 1x1 convs as matrices).
    wh = wh_t.reshape(Cin, 3)
    wv = wv_t.reshape(Cin, 3)
    w1 = w1_t.reshape(Cin, Cin)
    w2 = w2_t.reshape(Cout, Cin)

    out = w_forward_pallas(x, wh, bh, wv, bv, w1, w2)
    out = jax.block_until_ready(out)

    ref = w_forward_reference(x, wh_t, bh, wv_t, bv, w1_t, w2_t)
    assert out.shape == (N, Cout, H, W)
    assert jnp.allclose(out, ref, atol=1e-4, rtol=1e-4), "mismatch vs lax reference"
    print("KERNEL_OK")
</pallas_src>

<mosaic_0001>
module attributes {stable_mosaic.version = 11 : i64} {
  func.func @w_kernel(%arg0: i32, %arg1: memref<4x256xf32, #tpu.memory_space<vmem>>, %arg2: memref<4x3xf32, #tpu.memory_space<vmem>>, %arg3: memref<4x1xf32, #tpu.memory_space<vmem>>, %arg4: memref<4x3xf32, #tpu.memory_space<vmem>>, %arg5: memref<4x1xf32, #tpu.memory_space<vmem>>, %arg6: memref<4x4xf32, #tpu.memory_space<vmem>>, %arg7: memref<8x4xf32, #tpu.memory_space<vmem>>, %arg8: memref<4x256xf32, #tpu.memory_space<vmem>>, %arg9: memref<8x256xf32, #tpu.memory_space<vmem>>) attributes {dimension_semantics = [#tpu.dimension_semantics<parallel>], iteration_bounds = array<i64: 2>, scalar_prefetch = 0 : i64, scratch_operands = 0 : i64, tpu.core_type = #tpu.core_type<tc>, window_params = [{transform_indices = @transform_0, window_bounds = array<i64: 4, 256>}, {pipeline_mode = #tpu.pipeline_mode<synchronous>, transform_indices = @transform_1, window_bounds = array<i64: 4, 3>}, {pipeline_mode = #tpu.pipeline_mode<synchronous>, transform_indices = @transform_2, window_bounds = array<i64: 4, 1>}, {pipeline_mode = #tpu.pipeline_mode<synchronous>, transform_indices = @transform_3, window_bounds = array<i64: 4, 3>}, {pipeline_mode = #tpu.pipeline_mode<synchronous>, transform_indices = @transform_4, window_bounds = array<i64: 4, 1>}, {pipeline_mode = #tpu.pipeline_mode<synchronous>, transform_indices = @transform_5, window_bounds = array<i64: 4, 4>}, {pipeline_mode = #tpu.pipeline_mode<synchronous>, transform_indices = @transform_6, window_bounds = array<i64: 8, 4>}, {pipeline_mode = #tpu.pipeline_mode<synchronous>, transform_indices = @transform_7, window_bounds = array<i64: 4, 256>}, {transform_indices = @transform_8, window_bounds = array<i64: 8, 256>}]} {
    %c0 = arith.constant 0 : index
    %c0_0 = arith.constant 0 : index
    %0 = vector.load %arg1[%c0, %c0_0] : memref<4x256xf32, #tpu.memory_space<vmem>>, vector<4x256xf32>
    %c0_1 = arith.constant 0 : index
    %c0_2 = arith.constant 0 : index
    %1 = vector.load %arg2[%c0_1, %c0_2] : memref<4x3xf32, #tpu.memory_space<vmem>>, vector<4x3xf32>
    %c0_3 = arith.constant 0 : index
    %c0_4 = arith.constant 0 : index
    %2 = vector.load %arg4[%c0_3, %c0_4] : memref<4x3xf32, #tpu.memory_space<vmem>>, vector<4x3xf32>
    %c0_5 = arith.constant 0 : index
    %c0_6 = arith.constant 0 : index
    %3 = vector.load %arg8[%c0_5, %c0_6] : memref<4x256xf32, #tpu.memory_space<vmem>>, vector<1x256xf32>
    %c1 = arith.constant 1 : index
    %c0_7 = arith.constant 0 : index
    %4 = vector.load %arg8[%c1, %c0_7] : memref<4x256xf32, #tpu.memory_space<vmem>>, vector<1x256xf32>
    %c2 = arith.constant 2 : index
    %c0_8 = arith.constant 0 : index
    %5 = vector.load %arg8[%c2, %c0_8] : memref<4x256xf32, #tpu.memory_space<vmem>>, vector<1x256xf32>
    %c3 = arith.constant 3 : index
    %c0_9 = arith.constant 0 : index
    %6 = vector.load %arg8[%c3, %c0_9] : memref<4x256xf32, #tpu.memory_space<vmem>>, vector<1x256xf32>
    %c1_i32 = arith.constant 1 : i32
    %7 = tpu.dynamic_rotate %0 by %c1_i32 dim 1 : vector<4x256xf32>, i32 -> vector<4x256xf32>
    %8 = vector.broadcast %3 : vector<1x256xf32> to vector<4x256xf32>
    %9 = arith.mulf %7, %8 : vector<4x256xf32>
    %c255_i32 = arith.constant 255 : i32
    %10 = tpu.dynamic_rotate %0 by %c255_i32 dim 1 : vector<4x256xf32>, i32 -> vector<4x256xf32>
    %11 = vector.broadcast %4 : vector<1x256xf32> to vector<4x256xf32>
    %12 = arith.mulf %10, %11 : vector<4x256xf32>
    %13 = vector.extract_strided_slice %1 {offsets = [0, 1], sizes = [4, 1], strides = [1, 1]} : vector<4x3xf32> to vector<4x1xf32>
    %14 = vector.broadcast %13 : vector<4x1xf32> to vector<4x256xf32>
    %15 = arith.mulf %14, %0 : vector<4x256xf32>
    %c0_10 = arith.constant 0 : index
    %c0_11 = arith.constant 0 : index
    %16 = vector.load %arg3[%c0_10, %c0_11] : memref<4x1xf32, #tpu.memory_space<vmem>>, vector<4x1xf32>
    %17 = vector.broadcast %16 : vector<4x1xf32> to vector<4x256xf32>
    %18 = arith.addf %15, %17 : vector<4x256xf32>
    %19 = vector.extract_strided_slice %1 {offsets = [0, 0], sizes = [4, 1], strides = [1, 1]} : vector<4x3xf32> to vector<4x1xf32>
    %20 = vector.broadcast %19 : vector<4x1xf32> to vector<4x256xf32>
    %21 = arith.mulf %20, %9 : vector<4x256xf32>
    %22 = vector.extract_strided_slice %1 {offsets = [0, 2], sizes = [4, 1], strides = [1, 1]} : vector<4x3xf32> to vector<4x1xf32>
    %23 = vector.broadcast %22 : vector<4x1xf32> to vector<4x256xf32>
    %24 = arith.mulf %23, %12 : vector<4x256xf32>
    %25 = arith.addf %21, %24 : vector<4x256xf32>
    %26 = arith.addf %18, %25 : vector<4x256xf32>
    %cst = arith.constant 0.000000e+00 : f32
    %27 = vector.broadcast %cst : f32 to vector<4x256xf32>
    %28 = arith.maximumf %26, %27 : vector<4x256xf32>
    %c0_12 = arith.constant 0 : index
    %c0_13 = arith.constant 0 : index
    %29 = vector.load %arg6[%c0_12, %c0_13] : memref<4x4xf32, #tpu.memory_space<vmem>>, vector<4x4xf32>
    %cst_14 = arith.constant dense<0.000000e+00> : vector<4x256xf32>
    %30 = tpu.matmul %29, %28, %cst_14 {dimension_numbers = #tpu.dot_dimension_numbers<[1], [0], [0], [1], [0, 0, 1, 1], [], []>} : vector<4x4xf32>, vector<4x256xf32>, vector<4x256xf32> -> vector<4x256xf32>
    %c16_i32 = arith.constant 16 : i32
    %31 = tpu.dynamic_rotate %30 by %c16_i32 dim 1 : vector<4x256xf32>, i32 -> vector<4x256xf32>
    %32 = vector.broadcast %5 : vector<1x256xf32> to vector<4x256xf32>
    %33 = arith.mulf %31, %32 : vector<4x256xf32>
    %c240_i32 = arith.constant 240 : i32
    %34 = tpu.dynamic_rotate %30 by %c240_i32 dim 1 : vector<4x256xf32>, i32 -> vector<4x256xf32>
    %35 = vector.broadcast %6 : vector<1x256xf32> to vector<4x256xf32>
    %36 = arith.mulf %34, %35 : vector<4x256xf32>
    %37 = vector.extract_strided_slice %2 {offsets = [0, 1], sizes = [4, 1], strides = [1, 1]} : vector<4x3xf32> to vector<4x1xf32>
    %38 = vector.broadcast %37 : vector<4x1xf32> to vector<4x256xf32>
    %39 = arith.mulf %38, %30 : vector<4x256xf32>
    %c0_15 = arith.constant 0 : index
    %c0_16 = arith.constant 0 : index
    %40 = vector.load %arg5[%c0_15, %c0_16] : memref<4x1xf32, #tpu.memory_space<vmem>>, vector<4x1xf32>
    %41 = vector.broadcast %40 : vector<4x1xf32> to vector<4x256xf32>
    %42 = arith.addf %39, %41 : vector<4x256xf32>
    %43 = vector.extract_strided_slice %2 {offsets = [0, 0], sizes = [4, 1], strides = [1, 1]} : vector<4x3xf32> to vector<4x1xf32>
    %44 = vector.broadcast %43 : vector<4x1xf32> to vector<4x256xf32>
    %45 = arith.mulf %44, %33 : vector<4x256xf32>
    %46 = vector.extract_strided_slice %2 {offsets = [0, 2], sizes = [4, 1], strides = [1, 1]} : vector<4x3xf32> to vector<4x1xf32>
    %47 = vector.broadcast %46 : vector<4x1xf32> to vector<4x256xf32>
    %48 = arith.mulf %47, %36 : vector<4x256xf32>
    %49 = arith.addf %45, %48 : vector<4x256xf32>
    %50 = arith.addf %42, %49 : vector<4x256xf32>
    %cst_17 = arith.constant 0.000000e+00 : f32
    %51 = vector.broadcast %cst_17 : f32 to vector<4x256xf32>
    %52 = arith.maximumf %50, %51 : vector<4x256xf32>
    %c0_18 = arith.constant 0 : index
    %c0_19 = arith.constant 0 : index
    %53 = vector.load %arg7[%c0_18, %c0_19] : memref<8x4xf32, #tpu.memory_space<vmem>>, vector<8x4xf32>
    %cst_20 = arith.constant dense<0.000000e+00> : vector<8x256xf32>
    %54 = tpu.matmul %53, %52, %cst_20 {dimension_numbers = #tpu.dot_dimension_numbers<[1], [0], [0], [1], [0, 0, 1, 1], [], []>} : vector<8x4xf32>, vector<4x256xf32>, vector<8x256xf32> -> vector<8x256xf32>
    %c0_21 = arith.constant 0 : index
    %c0_22 = arith.constant 0 : index
    %55 = vector.load %arg9[%c0_21, %c0_22] : memref<8x256xf32, #tpu.memory_space<vmem>>, vector<8x256xf32>
    tpu.vector_store %arg9[%c0_21, %c0_22], %54 {strides = array<i32>} : memref<8x256xf32, #tpu.memory_space<vmem>>, vector<8x256xf32>,
    return
  }
  func.func @transform_0(%arg0: i32) -> (i32, i32) {
    %c0_i32 = arith.constant 0 : i32
    %c0_i32_0 = arith.constant 0 : i32
    return %c0_i32, %arg0 : i32, i32
  }
  func.func @transform_1(%arg0: i32) -> (i32, i32) {
    %c0_i32 = arith.constant 0 : i32
    %c0_i32_0 = arith.constant 0 : i32
    %c0_i32_1 = arith.constant 0 : i32
    return %c0_i32, %c0_i32_0 : i32, i32
  }
  func.func @transform_2(%arg0: i32) -> (i32, i32) {
    %c0_i32 = arith.constant 0 : i32
    %c0_i32_0 = arith.constant 0 : i32
    %c0_i32_1 = arith.constant 0 : i32
    return %c0_i32, %c0_i32_0 : i32, i32
  }
  func.func @transform_3(%arg0: i32) -> (i32, i32) {
    %c0_i32 = arith.constant 0 : i32
    %c0_i32_0 = arith.constant 0 : i32
    %c0_i32_1 = arith.constant 0 : i32
    return %c0_i32, %c0_i32_0 : i32, i32
  }
  func.func @transform_4(%arg0: i32) -> (i32, i32) {
    %c0_i32 = arith.constant 0 : i32
    %c0_i32_0 = arith.constant 0 : i32
    %c0_i32_1 = arith.constant 0 : i32
    return %c0_i32, %c0_i32_0 : i32, i32
  }
  func.func @transform_5(%arg0: i32) -> (i32, i32) {
    %c0_i32 = arith.constant 0 : i32
    %c0_i32_0 = arith.constant 0 : i32
    %c0_i32_1 = arith.constant 0 : i32
    return %c0_i32, %c0_i32_0 : i32, i32
  }
  func.func @transform_6(%arg0: i32) -> (i32, i32) {
    %c0_i32 = arith.constant 0 : i32
    %c0_i32_0 = arith.constant 0 : i32
    %c0_i32_1 = arith.constant 0 : i32
    return %c0_i32, %c0_i32_0 : i32, i32
  }
  func.func @transform_7(%arg0: i32) -> (i32, i32) {
    %c0_i32 = arith.constant 0 : i32
    %c0_i32_0 = arith.constant 0 : i32
    %c0_i32_1 = arith.constant 0 : i32
    return %c0_i32, %c0_i32_0 : i32, i32
  }
  func.func @transform_8(%arg0: i32) -> (i32, i32) {
    %c0_i32 = arith.constant 0 : i32
    %c0_i32_0 = arith.constant 0 : i32
    return %c0_i32, %arg0 : i32, i32
  }
}

</mosaic_0001>

<bundles_post_ra>
// kernel: tpu_custom_call.1
= control target key start
LH: loop header
LB: loop body
LE: loop exit
PB: predicated region body
PF: predicated region fallthrough
CT: control target
= control target key end

     0   :  { %13 = vsyncpa [#allocation3], 0  ;;  %s1291_s0 = inlined_call_operand.vmem [shape: f32[4,512], index: 0, kind: input, shape index: {}]   ;;  %s1292_s1 = inlined_call_operand.hbm [shape: f32[4,3], index: 1, kind: input, shape index: {}]   ;;  %s1293_s2 = inlined_call_operand.vmem [shape: f32[4,1], index: 2, kind: input, shape index: {}]   ;;  %s1294_s3 = inlined_call_operand.hbm [shape: f32[4,3], index: 3, kind: input, shape index: {}]   ;;  %s1295_s4 = inlined_call_operand.vmem [shape: f32[4,1], index: 4, kind: input, shape index: {}]   ;;  %s1296_s5 = inlined_call_operand.hbm [shape: f32[4,4], index: 5, kind: input, shape index: {}]   ;;  %s1297_s6 = inlined_call_operand.vmem [shape: f32[8,4], index: 6, kind: input, shape index: {}]   ;;  %s1298_s7 = inlined_call_operand.vmem [shape: f32[4,256], index: 7, kind: input, shape index: {}]   ;;  %s1299_s8 = inlined_call_operand.hbm [shape: f32[8,512], index: 8, kind: output, shape index: {}]  }
   0x1   :  { %14 = vsyncpa [#allocation6], 0 }
   0x2   :  { %15 = vsyncpa [#allocation4], 0 }
   0x3   :  { %17 = vsyncpa [#allocation4 + $0x1], 0  ;;  %s1095_s27 = smov 0   ;;  %s1097_s28 = smov 0  }
   0x4   :  { %s1099_s29 = smov 0   ;;  %s1101_s30 = smov 0  }
   0x5 LB: > { %s1116_s9 = sadd.s32 4294967295, %s1036_s30   ;;  %s777_s10 = sadd.s32 4294967294, %s1036_s30   ;;  %s1036_s30 = sphi %s1101_s30, %s1317_s30   ;;  %s1032_s29 = sphi %s1099_s29, %s1316_s29   ;;  %s1028_s28 = sphi %s1097_s28, %s1315_s28   ;;  %s1024_s27 = sphi %s1095_s27, %s1314_s27  }
   0x6   : > { %s1120_s11 = sadd.s32 1, %s1036_s30   ;;  %s203_s12 = sadd.s32 1, %s1032_s29 }
   0x7   : > { %s200_s13 = ssub.s32 %s1036_s30, %s1120_s11  ;;  %p213_p0 = scmp.ne.s32.totalorder %s1032_s29, %s1028_s28 }
   0x8   : > { %p201_p1 = scmp.eq.s32.totalorder %s200_s13, 0  ;;  %p214_p2 = scmp.eq.s32.totalorder %s1116_s9, 1 }
   0x9   : > { %p219_p3 = scmp.ne.s32.totalorder %s1028_s28, %s1024_s27  ;;  %p220_p4 = scmp.eq.s32.totalorder %s777_s10, 1 }
   0xa   : > { %s1131_s14 = scalar_select %p201_p1, %s1032_s29, %s203_s12  }
   0xb   : > { %p1133_p5 = por %p214_p2, %p213_p0  ;;  %p1137_p6 = por %p220_p4, %p219_p3 }
   0xc   : > { %p778_p7 = scmp.ge.s32.totalorder %s1036_s30, 1  ;;  %p227_p8 = scmp.lt.s32.totalorder %s1036_s30, 3 }
   0xd   : > { %s1303_s15 = scalar_select %p1133_p5, 1, 0 }
   0xe   : > { %s1304_s16 = scalar_select %p1137_p6, 1, 0 }
   0xf   : > { %p1300_p9 = scmp.eq.s32.totalorder %s1116_s9, 0  ;;  %p1144_p10 = pnand %p778_p7, %p227_p8 }
  0x10   : > { %s1038_s18 = smov [#allocation5]   ;;  %s1039_s20 = smov [#allocation2]  }
  0x11   : > { %s1305_s17 = scalar_select %p1144_p10, 1, 0 }
  0x12   : > { %s254_s19 = sshll.u32 %s1038_s18, 4  ;;  %p819_p11 = pneg %p1144_p10  ;;  %s255_s19 = int_to_ptr.vmem [resolvable:$true] %s254_s19 }
  0x13   : > { %s240_s21 = sshll.u32 %s1039_s20, 4  ;;  %s1040_s23 = smov [#allocation7]   ;;  %s241_s21 = int_to_ptr.vmem [resolvable:$true] %s240_s21 }
  0x14   : > { %p1152_p12 = pnand %p1300_p9, %p819_p11  ;;  %s268_s24 = sshll.u32 %s1040_s23, 4  ;;  %s1156_s24 = int_to_ptr.vmem [resolvable:$true] %s268_s24 }
  0x15   : > { %s901_s25 = scalar_lea.vmem %s255_s19, 64  ;;  %p909_p3 = scmp.lt.s32.totalorder %s255_s19, %s255_s19 }
  0x16   : > { %p892_p13 = pneg %p1152_p12  ;;  %p902_p0 = scmp.ne.s32.totalorder %s255_s19, %s901_s25 }
  0x17   : > { %p910_p4 = scmp.lt.s32.totalorder %s901_s25, %s901_s25 }
  0x18   : > { %p904_p1 = pnand %p902_p0, %p892_p13 }
  0x19   : > { %p911_p7 = por %p910_p4, %p909_p3 }
  0x1a   : > { %p905_p2 = pneg %p904_p1 }
  0x1c   : > { %p912_p8 = pnand %p911_p7, %p905_p2 }
  0x1e   : > { %915 = shalt.err (!%p912_p8)
}
  0x1f   : > { %825 = dma.hbm_to_vmem [thread:$0]  (!%p1152_p12), %s1294_s3, 64, %s255_s19, [#allocation6]  }
  0x20   : > { %s927_s12 = scalar_lea.vmem %s241_s21, 64  ;;  %p935_p0 = scmp.lt.s32.totalorder %s241_s21, %s241_s21 }
  0x21   : > { %p928_p11 = scmp.ne.s32.totalorder %s241_s21, %s927_s12  ;;  %p936_p1 = scmp.lt.s32.totalorder %s927_s12, %s927_s12 }
  0x23   : > { %p930_p9 = pnand %p928_p11, %p892_p13  ;;  %p937_p5 = por %p936_p1, %p935_p0 }
  0x25   : > { %p931_p6 = pneg %p930_p9 }
  0x27   : > { %p938_p10 = pnand %p937_p5, %p931_p6 }
  0x29   : > { %941 = shalt.err (!%p938_p10)
}
  0x2a   : > { %822 = dma.hbm_to_vmem [thread:$0]  (!%p1152_p12), %s1292_s1, 64, %s241_s21, [#allocation3]  }
  0x2b   : > { %s953_s19 = scalar_lea.vmem %s1156_s24, 64  ;;  %p961_p4 = scmp.lt.s32.totalorder %s1156_s24, %s1156_s24 }
  0x2c   : > { %p954_p2 = scmp.ne.s32.totalorder %s1156_s24, %s953_s19  ;;  %p962_p5 = scmp.lt.s32.totalorder %s953_s19, %s953_s19 }
  0x2e   : > { %p956_p9 = pnand %p954_p2, %p892_p13  ;;  %p963_p6 = por %p962_p5, %p961_p4 }
  0x30   : > { %p957_p3 = pneg %p956_p9 }
  0x32   : > { %p964_p10 = pnand %p963_p6, %p957_p3 }
  0x34   : > { %967 = shalt.err (!%p964_p10)
}
  0x35   : > { %828 = dma.hbm_to_vmem [thread:$0]  (!%p1152_p12), %s1296_s5, 64, %s1156_s24, [#allocation6]  }
  0x36   : > { %p1307_p7 = scmp.ne.s32.totalorder %s1305_s17, 0 }
  0x37   : > { %p1308_p8 = scmp.eq.s32.totalorder (!%p1307_p7), %s1116_s9, 0 }
  0x38   : > { %296 = sbr.rel (%p1307_p7) target bundleno = 757 (0x2f5), region = 52 }
  0x3d   : > { %1011 = dma.done.wait (%p1308_p8), [#allocation3], 64   ;;  %p1309_p13 = pmov %p1308_p8 }
  0x3e   : > { %p1310_p11 = pmov %p1308_p8 }
  0x3f   : > { %1013 = vsyncadd (%p1309_p13), [#allocation3], 4294967232 }
  0x40   : > { %1015 = dma.done.wait (%p1310_p11), [#allocation6], 128   ;;  %p1311_p0 = pmov %p1308_p8 }
  0x41   : > { %s788_s21 = sshll.u32 %s1116_s9, 1  ;;  %v1041_v0 = vmov 2   ;;  %v1042_v1 = vmov 1   ;;  %v346_v2 = vld [vmem:[#allocation2] sm:$0xf]  ;;  %v1043_v4 = vmov 0   ;;  %v362_v9 = vlaneseq }
  0x42   : > { %1017 = vsyncadd (%p1311_p0), [#allocation6], 4294967168  ;;  %885 = vset.pattern.permute.xlu1 %v1041_v0  ;;  %883 = vset.pattern.permute.xlu0 %v1042_v1  ;;  %p339_p12 = scmp.lt.s32.totalorder %s788_s21, 3  ;;  %s1044_s26 = smov 1   ;;  %v407_v6 = vld [vmem:[%s1293_s2] sm:$0xf] }
  0x43   : > { %422 = vperm.xlu1 %885, %v346_v2   ;;  %402 = vperm.xlu0 %883, %v346_v2   ;;  %s1045_s10 = smov 127   ;;  %v347_v7 = vld [vmem:[#allocation5] sm:$0xf]  ;;  %v1046_v8 = vmov 0.0   ;;  %v369_v12 = vshrl.u32 %v362_v9, 7  ;;  %v1208_v13 = vand.u32 127, %v362_v9 }
  0x44   : > { %s1319_s21 = smov (!%p339_p12, %s788_s21), 3  ;;  %509 = vmatprep.mubr.f32.mxu0 %v1046_v8  ;;  %663 = vmatprep.mubr.f32.mxu1 %v1046_v8  ;;  %v348_v18 = vld [vmem:[%s1298_s7] ss:$4 sm:$0x3]  ;;  %vm438_vm2 = vcmask 1043456   ;;  %vm434_vm3 = vcmask 31744  }
  0x45   : > { %s789_s17 = sshll.u32 %s1319_s21, 2  ;;  %v1210_v15 = vsub.s32 0, %v369_v12  ;;  %v1212_v16 = vsub.s32 1, %v369_v12  ;;  %vm364_vm0 = vcmp.lt.s32.totalorder %v1208_v13, 1  ;;  %vm384_vm1 = vcmp.lt.s32.totalorder %v1208_v13, 127  ;;  %s1047_s21 = smov 16  }
  0x46   : > { %s342_s25 = scalar_lea.vmem %s1291_s0, %s789_s17  ;;  %v790_v19 = vld [vmem:[%s1298_s7 + $0x1] ss:$4 sm:$0x3]  ;;  %v433_v50 = vld [vmem:[#allocation7] sm:$0xf]  ;;  %s1048_s17 = smov 112  }
  0x47   : > { %v345_v3 = vld [vmem:[%s342_s25] sm:$0xff]  ;;  %884 = vset.pattern.permute.xlu0 %v1043_v4  ;;  %886 = vset.pattern.permute.xlu1 %v1042_v1  ;;  %v371_v20 = vrot.slane %v348_v18, %v1210_v15  ;;  %v375_v21 = vrot.slane %v348_v18, %v1212_v16  ;;  %v391_v26 = vrot.slane %v790_v19, %v1210_v15  ;;  %vm540_vm4 = vcmp.lt.s32.totalorder %v1208_v13, 112  ;;  %s335_s19 = sand.u32 1, %s1028_s28   ;;  %p1312_p2 = scmp.ne.s32.totalorder %s1303_s15, 0 }
  0x48   : > { %358 = vrot.lane.b32.xlu1 %v345_v3, %s1044_s26  ;;  %v356_v5 = vcombine.high %v345_v3, %v345_v3  ;;  %416 = vperm.xlu0 %884, %v346_v2   ;;  %v395_v27 = vrot.slane %v790_v19, %v1212_v16  ;;  %v563_v53 = vld [vmem:[%s1295_s4] sm:$0xf]  ;;  %vm520_vm5 = vcmp.lt.s32.totalorder %v1208_v13, 16  ;;  %s787_s20 = sshll.u32 %s335_s19, 4 }
  0x49   : > { %v792_v59 = vld [vmem:[%s1298_s7 + $0x3] ss:$4 sm:$0x3]  ;;  %v791_v60 = vld [vmem:[%s1298_s7 + $0x2] ss:$4 sm:$0x3] }
  0x4a   : > { %v547_v62 = vrot.slane %v792_v59, %v1210_v15  ;;  %v551_v63 = vrot.slane %v792_v59, %v1212_v16  ;;  %v531_v4 = vrot.slane %v791_v60, %v1212_v16  ;;  %s337_s23 = scalar_lea.vmem [#allocation8], %s787_s20 }
  0x4c   : > { %360 = vrot.lane.b32.xlu1 %v356_v5, %s1044_s26  ;;  %380 = vrot.lane.b32.xlu0 %v345_v3, %s1045_s10  ;;  %s673_s26 = scalar_lea.sflag [#allocation4], %s335_s19 }
  0x50   : > { %382 = vrot.lane.b32.xlu1 %v356_v5, %s1045_s10  ;;  %410 = vperm.xlu0 %884, %v407_v6  }
  0x54   : > { %558 = vperm.xlu1 %886, %v347_v7   ;;  %572 = vperm.xlu0 %884, %v347_v7  }
  0x58   : > { %887 = vset.pattern.permute.xlu1 %v1041_v0 }
  0x59   : > { %578 = vperm.xlu1 %887, %v347_v7  }
  0xbe   : > { %v423_v10 = vpop.permute.xlu1 %422  ;;  %v403_v11 = vpop.permute.xlu0 %402 }
  0xbf   : > { %v405_v35 = vmul.f32 %v403_v11, %v345_v3  ;;  %v406_v36 = vmul.f32 %v403_v11, %v356_v5  ;;  %v527_v3 = vrot.slane %v791_v60, %v1210_v15 }
  0xc2   : > { %v359_v14 = vpop.permute.xlu1 %358 }
  0xc3   : > { %v417_v17 = vpop.permute.xlu0 %416 }
  0xc6   : > { %v361_v22 = vpop.permute.xlu1 %360 }
  0xc7   : > { %v365_v23 = vsel %vm364_vm0, %v359_v14, %v361_v22  ;;  %v366_v24 = vsel %vm364_vm0, %v361_v22, %v359_v14  ;;  %v381_v25 = vpop.permute.xlu0 %380 }
  0xc8   : > { %v378_v28 = vmul.f32 %v371_v20, %v366_v24  ;;  %v379_v29 = vmul.f32 %v375_v21, %v365_v23 }
  0xca   : > { %v383_v30 = vpop.permute.xlu1 %382  ;;  %v419_v38 = vmul.f32 %v417_v17, %v378_v28  ;;  %v420_v39 = vmul.f32 %v417_v17, %v379_v29 }
  0xcb   : > { %v385_v31 = vsel %vm384_vm1, %v381_v25, %v383_v30  ;;  %v386_v32 = vsel %vm384_vm1, %v383_v30, %v381_v25  ;;  %v411_v37 = vpop.permute.xlu0 %410 }
  0xcc   : > { %v398_v33 = vmul.f32 %v391_v26, %v385_v31  ;;  %v399_v34 = vmul.f32 %v395_v27, %v386_v32  ;;  %v413_v42 = vadd.f32 %v411_v37, %v405_v35  ;;  %v414_v43 = vadd.f32 %v411_v37, %v406_v36  ;;  %v589_v26 = vld [vmem:[%s1297_s6] sm:$0xff] }
  0xce   : > { %v425_v40 = vmul.f32 %v423_v10, %v398_v33  ;;  %v426_v41 = vmul.f32 %v423_v10, %v399_v34 }
  0xcf   : > { %v559_v54 = vpop.permute.xlu1 %558  ;;  %v573_v55 = vpop.permute.xlu0 %572 }
  0xd0   : > { %v427_v44 = vadd.f32 %v425_v40, %v419_v38  ;;  %v428_v45 = vadd.f32 %v426_v41, %v420_v39 }
  0xd2   : > { %v429_v46 = vadd.f32 %v427_v44, %v413_v42  ;;  %v430_v47 = vadd.f32 %v428_v45, %v414_v43 }
  0xd4   : > { %v432_v48 = vmax.f32 %v430_v47, 0.0  ;;  %v431_v49 = vmax.f32 %v429_v46, 0.0  ;;  %v579_v56 = vpop.permute.xlu1 %578 }
  0xd6   : > { %793 = vmatprep.subr.msk.mxu0 %vm438_vm2, %v432_v48 }
  0xd7   : > { %794 = vmatpush1.msk.msra.mxu0 %vm438_vm2, %v431_v49 }
  0xd8   : > { %795 = vmatmul.mubr.msk.f32.vlgmr.msra.gmra.mxu0 %vm434_vm3, %v433_v50 }
 0x198   : > { %v511_v51 = vpop.f32.mrf.mxu0 }
 0x199   : > { %516 = vrot.lane.b32.xlu0 %v511_v51, %s1047_s21  ;;  %v561_v18 = vmul.f32 %v559_v54, %v511_v51 }
 0x19a   : > { %v513_v52 = vpop.f32.mrf.mxu0 }
 0x19b   : > { %518 = vrot.lane.b32.xlu1 %v513_v52, %s1047_s21  ;;  %v562_v13 = vmul.f32 %v559_v54, %v513_v52  ;;  %s687_s21 = sshll.u32 %s337_s23, 4  ;;  %s1253_s21 = int_to_ptr.vmem [resolvable:$true] %s687_s21 }
 0x19c   : > { %s968_s10 = scalar_lea.vmem %s1253_s21, 256 }
 0x19d   : > { %536 = vrot.lane.b32.xlu0 %v511_v51, %s1048_s17  ;;  %p969_p1 = scmp.ne.s32.totalorder %s1253_s21, %s968_s10 }
 0x19f   : > { %538 = vrot.lane.b32.xlu1 %v513_v52, %s1048_s17  ;;  %s804_s17 = sshll.u32 %s1116_s9, 8  ;;  %p970_p9 = pnand %p969_p1, %p1312_p2 }
 0x1a0   : > { %s685_s25 = scalar_lea.hbm %s1299_s8, %s804_s17  ;;  %s1049_s9 = smov [#allocation8]  }
 0x1a1   : > { %566 = vperm.xlu0 %884, %v563_v53   ;;  %p971_p3 = pneg %p970_p9  ;;  %s972_s12 = sshll.u32 %s1049_s9, 4  ;;  %s973_s12 = int_to_ptr.vmem [resolvable:$false] %s972_s12 }
 0x1a2   : > { %s974_s13 = scalar_lea.vmem %s973_s12, 512  ;;  %p975_p4 = scmp.lt.s32.totalorder %s1253_s21, %s973_s12 }
 0x1a3   : > { %p976_p5 = scmp.lt.s32.totalorder %s974_s13, %s968_s10 }
 0x1a5   : > { %888 = vset.pattern.permute.xlu0 %v1041_v0  ;;  %p977_p6 = por %p976_p5, %p975_p4 }
 0x1a7   : > { %p978_p10 = pnand %p977_p6, %p971_p3 }
 0x20b   : > { %v517_v57 = vpop.permute.xlu0 %516 }
 0x20d   : > { %v519_v58 = vpop.permute.xlu1 %518 }
 0x20e   : > { %v521_v5 = vsel %vm520_vm5, %v517_v57, %v519_v58  ;;  %v522_v6 = vsel %vm520_vm5, %v519_v58, %v517_v57 }
 0x20f   : > { %v537_v61 = vpop.permute.xlu0 %536  ;;  %v534_v9 = vmul.f32 %v527_v3, %v522_v6  ;;  %v535_v10 = vmul.f32 %v531_v4, %v521_v5 }
 0x211   : > { %v539_v0 = vpop.permute.xlu1 %538  ;;  %v575_v14 = vmul.f32 %v573_v55, %v534_v9  ;;  %v576_v17 = vmul.f32 %v573_v55, %v535_v10 }
 0x212   : > { %v541_v1 = vsel %vm540_vm4, %v537_v61, %v539_v0  ;;  %v542_v2 = vsel %vm540_vm4, %v539_v0, %v537_v61 }
 0x213   : > { %v554_v7 = vmul.f32 %v547_v62, %v541_v1  ;;  %v555_v8 = vmul.f32 %v551_v63, %v542_v2 }
 0x215   : > { %v581_v11 = vmul.f32 %v579_v56, %v554_v7  ;;  %v582_v12 = vmul.f32 %v579_v56, %v555_v8 }
 0x217   : > { %v583_v15 = vadd.f32 %v581_v11, %v575_v14  ;;  %v584_v22 = vadd.f32 %v582_v12, %v576_v17 }
 0x21c   : > { %v567_v19 = vpop.permute.xlu0 %566 }
 0x21d   : > { %v569_v20 = vadd.f32 %v567_v19, %v561_v18  ;;  %v570_v21 = vadd.f32 %v567_v19, %v562_v13 }
 0x21f   : > { %v585_v16 = vadd.f32 %v583_v15, %v569_v20  ;;  %v586_v23 = vadd.f32 %v584_v22, %v570_v21 }
 0x221   : > { %v587_v24 = vmax.f32 %v585_v16, 0.0  ;;  %v588_v25 = vmax.f32 %v586_v23, 0.0 }
 0x223   : > { %796 = vmatprep.subr.msk.mxu1 %vm438_vm2, %v588_v25 }
 0x224   : > { %797 = vmatpush1.msk.msra.mxu1 %vm438_vm2, %v587_v24 }
 0x225   : > { %798 = vmatmul.mubr.msk.f32.vlgmr.msra.gmra.mxu1 %vm434_vm3, %v589_v26 }
 0x2e5   : > { %v665_v27 = vpop.f32.mrf.mxu1 }
 0x2e6   : > { %670 = vst [vmem:[%s337_s23] sm:$0xff] %v665_v27 }
 0x2e7   : > { %v667_v28 = vpop.f32.mrf.mxu1 }
 0x2e8   : > { %671 = vst [vmem:[%s337_s23 + $0x8] sm:$0xff] %v667_v28 }
 0x2e9   : > { %981 = shalt.err (!%p978_p10)
}
 0x2ea   : > { %s982_s18 = scalar_lea.hbm %s685_s25, 256  ;;  %s986_s23 = scalar_lea.hbm %s1299_s8, 512 }
 0x2eb   : > { %p983_p7 = scmp.ne.s32.totalorder %s685_s25, %s982_s18  ;;  %p987_p11 = scmp.lt.s32.totalorder %s685_s25, %s1299_s8 }
 0x2ec   : > { %p988_p0 = scmp.lt.s32.totalorder %s986_s23, %s982_s18 }
 0x2ed   : > { %p984_p8 = pnand %p983_p7, %p1312_p2 }
 0x2ee   : > { %p989_p12 = por %p988_p0, %p987_p11 }
 0x2ef   : > { %p985_p13 = pneg %p984_p8 }
 0x2f1   : > { %p990_p1 = pnand %p989_p12, %p985_p13 }
 0x2f3   : > { %993 = shalt.err (!%p990_p1)
}
 0x2f4   : > { %817 = dma.vmem_to_hbm [thread:$0]  (%p1312_p2), %s1253_s21, 256, %s685_s25, %s673_s26  }
 0x2f5 PF: > { %p839_p9 = scmp.ge.s32.totalorder %s1036_s30, 2  ;;  %s699_s24 = sand.u32 1, %s1024_s27  }
 0x2f6   : > { %p1313_p3 = scmp.ne.s32.totalorder %s1304_s16, 0  ;;  %s700_s10 = scalar_lea.sflag [#allocation4], %s699_s24 }
 0x2f8   : > { %p830_p4 = pnand %p839_p9, %p1313_p3 }
 0x2fa   : > { %p831_p5 = pneg %p830_p4 }
 0x2fc   : > { %1019 = dma.done.wait (%p831_p5), %s700_s10, 256  }
 0x2fd   : > { %1021 = vsyncadd (%p831_p5), %s700_s10, 4294967040  ;;  %p20_p6 = scmp.ge.s32.totalorder %s1120_s11, 4   ;;  %s1314_s27 = smov %s1028_s28 }
 0x2fe   : > { %s1315_s28 = smov %s1032_s29  ;;  %s1316_s29 = smov %s1131_s14 }
 0x2ff   : > { %s1317_s30 = smov %s1120_s11  ;;  %22 = sbr.rel (!%p20_p6) target bundleno = 5 (0x5), region = 103 }
 0x304   :  { %705 = vsyncpa [#allocation3], 1 }
 0x305   :  { %707 = vsyncpa [#allocation3 + $0x1], 1 }
 0x306   :  { %708 = vsyncpa [#allocation6], 1 }
 0x307   :  { %709 = vsyncpa [#allocation4], 1 }
 0x308   :  { %711 = vsyncpa [#allocation4 + $0x1], 1 }

</bundles_post_ra>
